<compile_context>
chip_gen: v6e
topology: v6e:2x2x1
jax: 0.10.0
libtpu: 0.0.40
codegen_flags: <defaults>
</compile_context>

<pallas_src>
import functools

import jax
import jax.numpy as jnp
from jax.experimental import pallas as pl
from jax.experimental.pallas import tpu as pltpu

_EPS = 1e-5  # PyTorch nn.InstanceNorm1d default eps


def _round_up(x, m):
    return ((x + m - 1) // m) * m


def _sublane_multiple(dtype):
    it = jnp.dtype(dtype).itemsize
    if it >= 4:
        return 8
    if it == 2:
        return 16
    return 32


def _vmem_budgets():
    """(scoped-VMEM limit to request, pipeline-buffer budget) for this chip."""
    cap = 64 * 1024 * 1024  # conservative floor = v7x per-core physical VMEM
    try:
        info = pltpu.get_tpu_info()
        cap = int(getattr(info, "vmem_capacity_bytes", cap))
    except Exception:
        pass  # interpret mode / CPU AOT / older jax -- keep the conservative floor
    limit = min(max(cap // 2, 32 * 1024 * 1024), 64 * 1024 * 1024)
    budget = (limit * 3) // 4  # headroom for in-kernel f32 temps & metadata
    return limit, budget


def _prep_style(p, B, N, stream_dtype):
    """Return gamma/beta as a small 2-D array plus a layout kind, without
    materializing a full (B, N) HBM stream unless the param is truly full-width.

    kinds: 'bn' (B, N) | 'b1' (B, 1) | '1n' (1, N) | '11' (1, 1)
    """
    p = jnp.asarray(p)
    if p.size == B * N:
        p2 = p.reshape(B, N)
        # Memory-bound kernel: carry full-width style params at the activation
        # dtype (e.g. bf16) to halve their HBM stream; upcast per-vreg in-kernel.
        if jnp.dtype(stream_dtype).itemsize < jnp.dtype(p2.dtype).itemsize:
            p2 = p2.astype(stream_dtype)
        return p2, "bn"
    if p.size == B:
        return p.reshape(B, 1), "b1"
    if p.size == N:
        return p.reshape(1, N), "1n"
    if p.size == 1:
        return p.reshape(1, 1), "11"
    # TODO(synk): per-channel (B, C, 1) layouts against flattened N = C*L need a
    # dedicated (TB, C)-blocked path; the generic right-aligned broadcast below
    # raises if the shapes are not broadcast-compatible rather than going wrong.
    return jnp.broadcast_to(p, (B, N)).astype(stream_dtype), "bn"


def _pad_rows(a, b_pad):
    if a.shape[0] == b_pad or a.shape[0] == 1:
        return a
    return jnp.pad(a, ((0, b_pad - a.shape[0]), (0, 0)))


def _pad_cols(a, n_pad):
    if a.shape[1] == n_pad or a.shape[1] == 1:
        return a
    return jnp.pad(a, ((0, 0), (0, n_pad - a.shape[1])))


# ---------------------------------------------------------------------------
# Kernel 1: whole row resident in VMEM (reduction never crosses tiles).
# ---------------------------------------------------------------------------
def _row_kernel(x_ref, g_ref, b_ref, out_ref):
    x = x_ref[...].astype(jnp.float32)
    mean = jnp.mean(x, axis=-1, keepdims=True)
    xc = x - mean
    var = jnp.mean(xc * xc, axis=-1, keepdims=True)  # biased, centered
    inv_std = jax.lax.rsqrt(var + _EPS)
    g = g_ref[...].astype(jnp.float32)
    b = b_ref[...].astype(jnp.float32)
    # (x - mean) * inv_std * (g + 1) + b  with g/b broadcast from their native block.
    out_ref[...] = (xc * ((g + 1.0) * inv_std) + b).astype(out_ref.dtype)


# ---------------------------------------------------------------------------
# Kernel 2: N-tiled two-phase reduction for rows too long for VMEM.
# grid = (B/TB, 2, N/TN); phase 0 accumulates sum/sumsq, phase 1 normalizes.
# ---------------------------------------------------------------------------
def _tiled_kernel(x_ref, g_ref, b_ref, out_ref, sum_ref, ssq_ref, *, inv_n):
    ph = pl.program_id(1)
    k = pl.program_id(2)

    @pl.when((ph == 0) & (k == 0))
    def _init():
        sum_ref[...] = jnp.zeros_like(sum_ref)
        ssq_ref[...] = jnp.zeros_like(ssq_ref)

    @pl.when(ph == 0)
    def _accumulate():
        x = x_ref[...].astype(jnp.float32)
        sum_ref[...] += jnp.sum(x, axis=-1, keepdims=True)
        ssq_ref[...] += jnp.sum(x * x, axis=-1, keepdims=True)

    @pl.when((ph == 1) & (k == 0))
    def _finalize_stats():
        mean = sum_ref[...] * inv_n
        var = jnp.maximum(ssq_ref[...] * inv_n - mean * mean, 0.0)
        sum_ref[...] = mean                       # scratch now holds mean
        ssq_ref[...] = jax.lax.rsqrt(var + _EPS)  # scratch now holds inv_std

    @pl.when(ph == 1)
    def _normalize():
        x = x_ref[...].astype(jnp.float32)
        g = g_ref[...].astype(jnp.float32)
        b = b_ref[...].astype(jnp.float32)
        a = (g + 1.0) * ssq_ref[...]
        out_ref[...] = (x * a + (b - sum_ref[...] * a)).astype(out_ref.dtype)


# ---------------------------------------------------------------------------
# Wrappers
# ---------------------------------------------------------------------------
def _adpin1d_rows(x2, g2, gkind, b2, bkind, tb, vmem_limit):
    B, N = x2.shape
    b_pad = _round_up(B, tb)
    xp = _pad_rows(x2, b_pad)
    gp = _pad_rows(g2, b_pad)
    bp = _pad_rows(b2, b_pad)

    def style_spec(kind):
        if kind == "bn":
            return pl.BlockSpec((tb, N), lambda i: (i, 0))
        if kind == "b1":
            return pl.BlockSpec((tb, 1), lambda i: (i, 0))
        if kind == "1n":
            return pl.BlockSpec((1, N), lambda i: (0, 0))
        return pl.BlockSpec((1, 1), lambda i: (0, 0))

    row_spec = pl.BlockSpec((tb, N), lambda i: (i, 0))
    bytes_accessed = (2 * xp.size * xp.dtype.itemsize
                      + gp.size * gp.dtype.itemsize
                      + bp.size * bp.dtype.itemsize)
    cost = pl.CostEstimate(flops=8 * b_pad * N, transcendentals=b_pad,
                           bytes_accessed=int(bytes_accessed))

    out = pl.pallas_call(
        _row_kernel,
        out_shape=jax.ShapeDtypeStruct((b_pad, N), x2.dtype),
        grid=(b_pad // tb,),
        in_specs=[row_spec, style_spec(gkind), style_spec(bkind)],
        out_specs=row_spec,
        compiler_params=pltpu.CompilerParams(
            dimension_semantics=("parallel",),  # megacore sharding on v7x
            vmem_limit_bytes=vmem_limit,
        ),
        cost_estimate=cost,
    )(xp, gp, bp)
    return out[:B]


def _adpin1d_tiled(x2, g2, gkind, b2, bkind, budget, vmem_limit, per_elem, sub,
                   max_block_cols):
    B, N = x2.shape
    tb = B if B <= sub else sub
    tn_cap = max(budget // max(per_elem * tb, 1), 128)
    if max_block_cols is not None:
        tn_cap = min(tn_cap, max(max_block_cols, 128))
    tn = max((tn_cap // 128) * 128, 128)
    tn = min(tn, _round_up(N, 128))

    b_pad = _round_up(B, tb)
    n_pad = _round_up(N, tn)
    # Zero padding keeps sum/sumsq exact because the mean divides by the true N.
    xp = _pad_cols(_pad_rows(x2, b_pad), n_pad)
    gp = _pad_cols(_pad_rows(g2, b_pad), n_pad)
    bp = _pad_cols(_pad_rows(b2, b_pad), n_pad)

    def style_spec(kind):
        if kind == "bn":
            return pl.BlockSpec((tb, tn), lambda i, p, k: (i, k * p))
        if kind == "b1":
            return pl.BlockSpec((tb, 1), lambda i, p, k: (i, 0))
        if kind == "1n":
            return pl.BlockSpec((1, tn), lambda i, p, k: (0, k * p))
        return pl.BlockSpec((1, 1), lambda i, p, k: (0, 0))

    x_spec = pl.BlockSpec((tb, tn), lambda i, p, k: (i, k))
    # Output (and full-width style) blocks only advance in phase 1 -> written once.
    out_spec = pl.BlockSpec((tb, tn), lambda i, p, k: (i, k * p))

    kernel = functools.partial(_tiled_kernel, inv_n=1.0 / N)
    bytes_accessed = (3 * xp.size * xp.dtype.itemsize   # x read twice + out
                      + gp.size * gp.dtype.itemsize
                      + bp.size * bp.dtype.itemsize)
    cost = pl.CostEstimate(flops=9 * b_pad * n_pad, transcendentals=b_pad,
                           bytes_accessed=int(bytes_accessed))

    out = pl.pallas_call(
        kernel,
        out_shape=jax.ShapeDtypeStruct((b_pad, n_pad), x2.dtype),
        grid=(b_pad // tb, 2, n_pad // tn),
        in_specs=[x_spec, style_spec(gkind), style_spec(bkind)],
        out_specs=out_spec,
        scratch_shapes=[pltpu.VMEM((tb, 1), jnp.float32),
                        pltpu.VMEM((tb, 1), jnp.float32)],
        compiler_params=pltpu.CompilerParams(
            dimension_semantics=("parallel", "arbitrary", "arbitrary"),
            vmem_limit_bytes=vmem_limit,
        ),
        cost_estimate=cost,
    )(xp, gp, bp)
    return out[:B, :N]


def adpin1d(x, gamma, beta, *, max_block_rows=None, max_block_cols=None):
    """Adaptive instance norm: normalize each batch row of x (flattened exactly
    like x.view(B, 1, -1)), then modulate with (gamma + 1) and beta.

    Returns (B, N). Note: for B == 1 PyTorch's .squeeze() yields (N,); callers
    porting that corner case should squeeze the leading dim themselves.
    """
    B = x.shape[0]
    x2 = x.reshape(B, -1)
    N = x2.shape[1]
    g2, gkind = _prep_style(gamma, B, N, x2.dtype)
    b2, bkind = _prep_style(beta, B, N, x2.dtype)

    vmem_limit, budget = _vmem_budgets()
    sub = _sublane_multiple(x2.dtype)
    x_it = jnp.dtype(x2.dtype).itemsize

    # Per-element footprint: double-buffered x in + out, double-buffered full-width
    # style streams (if any), plus ~2 block-sized f32 temporaries inside the kernel.
    per_elem = 2 * 2 * x_it + 2 * 4
    if gkind == "bn":
        per_elem += 2 * jnp.dtype(g2.dtype).itemsize
    if bkind == "bn":
        per_elem += 2 * jnp.dtype(b2.dtype).itemsize

    tb_cap = budget // max(per_elem * N, 1)
    if max_block_rows is not None:
        tb_cap = min(tb_cap, max_block_rows)

    if tb_cap >= B:
        # Whole batch fits: still split into >= 2 blocks when B allows so both
        # TensorCores on v7x get work (harmless extra grid step on v5e/v6e).
        tb = max(sub, ((B // 2) // sub) * sub) if B >= 2 * sub else B
    else:
        tb = (tb_cap // sub) * sub
        if tb == 0:
            tb = (tb_cap // 8) * 8  # base (8,128) alignment is still valid

    force_tiled = max_block_cols is not None and max_block_cols < N
    if tb > 0 and not force_tiled:
        return _adpin1d_rows(x2, g2, gkind, b2, bkind, tb, vmem_limit)
    return _adpin1d_tiled(x2, g2, gkind, b2, bkind, budget, vmem_limit, per_elem,
                          sub, max_block_cols)


def _reference(x, gamma, beta):
    B = x.shape[0]
    x2 = x.reshape(B, -1).astype(jnp.float32)
    mean = jnp.mean(x2, axis=-1, keepdims=True)
    var = jnp.mean((x2 - mean) ** 2, axis=-1, keepdims=True)
    y = (x2 - mean) * jax.lax.rsqrt(var + _EPS)
    g = jnp.asarray(gamma, jnp.float32)
    b = jnp.asarray(beta, jnp.float32)
    return y * (g.reshape(g.shape[0], -1) + 1.0) + b.reshape(b.shape[0], -1)


if __name__ == "__main__":
    key = jax.random.PRNGKey(0)
    kx, kg, kb = jax.random.split(key, 3)

    # --- Test 1: small f32 case, single (full-B) block along batch ---
    B, C = 4, 256
    x = jax.random.normal(kx, (B, C), dtype=jnp.float32)
    gamma = 0.1 * jax.random.normal(kg, (B, C), dtype=jnp.float32)
    beta = 0.1 * jax.random.normal(kb, (B, C), dtype=jnp.float32)
    out = jax.block_until_ready(adpin1d(x, gamma, beta))
    assert out.shape == (B, C)
    assert jnp.allclose(out, _reference(x, gamma, beta), atol=1e-4, rtol=1e-4)

    # --- Test 2: forced multi-step grid over the batch axis (pipelined path) ---
    B2, C2 = 16, 256
    x2 = jax.random.normal(kx, (B2, C2), dtype=jnp.float32)
    g2 = 0.1 * jax.random.normal(kg, (B2, C2), dtype=jnp.float32)
    b2 = 0.1 * jax.random.normal(kb, (B2, C2), dtype=jnp.float32)
    out2 = jax.block_until_ready(adpin1d(x2, g2, b2, max_block_rows=8))
    assert out2.shape == (B2, C2)
    assert jnp.allclose(out2, _reference(x2, g2, b2), atol=1e-4, rtol=1e-4)

    # --- Test 3: bf16 activations; full-width f32 style params get streamed bf16 ---
    x3 = jax.random.normal(kx, (B2, C2), dtype=jnp.bfloat16)
    out3 = jax.block_until_ready(adpin1d(x3, g2, b2, max_block_rows=8))
    assert out3.dtype == jnp.bfloat16
    assert jnp.allclose(out3.astype(jnp.float32), _reference(x3, g2, b2),
                        atol=5e-2, rtol=2e-2)

    # --- Test 4: forced N-tiled two-phase path (long-row fallback) ---
    B4, C4 = 8, 512
    x4 = jax.random.normal(kx, (B4, C4), dtype=jnp.float32)
    g4 = 0.1 * jax.random.normal(kg, (B4, C4), dtype=jnp.float32)
    b4 = 0.1 * jax.random.normal(kb, (B4, C4), dtype=jnp.float32)
    out4 = jax.block_until_ready(adpin1d(x4, g4, b4, max_block_cols=128))
    assert out4.shape == (B4, C4)
    assert jnp.allclose(out4, _reference(x4, g4, b4), atol=1e-3, rtol=1e-3)

    # --- Test 5: per-row style params (no (B, N) broadcast materialization) ---
    g5 = 0.1 * jax.random.normal(kg, (B2, 1), dtype=jnp.float32)
    b5 = 0.1 * jax.random.normal(kb, (B2, 1), dtype=jnp.float32)
    out5 = jax.block_until_ready(adpin1d(x2, g5, b5, max_block_rows=8))
    assert out5.shape == (B2, C2)
    assert jnp.allclose(out5, _reference(x2, g5, b5), atol=1e-4, rtol=1e-4)

    print("KERNEL_OK")
</pallas_src>

<mosaic_0001>
module attributes {stable_mosaic.version = 11 : i64} {
  func.func @_row_kernel(%arg0: i32, %arg1: memref<4x256xf32, #tpu.memory_space<vmem>>, %arg2: memref<4x256xf32, #tpu.memory_space<vmem>>, %arg3: memref<4x256xf32, #tpu.memory_space<vmem>>, %arg4: memref<4x256xf32, #tpu.memory_space<vmem>>) attributes {dimension_semantics = [#tpu.dimension_semantics<parallel>], iteration_bounds = array<i64: 1>, scalar_prefetch = 0 : i64, scratch_operands = 0 : i64, tpu.core_type = #tpu.core_type<tc>, window_params = [{transform_indices = @transform_0, window_bounds = array<i64: 4, 256>}, {transform_indices = @transform_1, window_bounds = array<i64: 4, 256>}, {transform_indices = @transform_2, window_bounds = array<i64: 4, 256>}, {transform_indices = @transform_3, window_bounds = array<i64: 4, 256>}]} {
    %c0 = arith.constant 0 : index
    %c0_0 = arith.constant 0 : index
    %0 = vector.load %arg1[%c0, %c0_0] : memref<4x256xf32, #tpu.memory_space<vmem>>, vector<4x256xf32>
    %cst = arith.constant dense<0.000000e+00> : vector<4xf32>
    %1 = vector.multi_reduction <add>, %0, %cst [1] : vector<4x256xf32> to vector<4xf32>
    %2 = vector.shape_cast %1 : vector<4xf32> to vector<4x1xf32>
    %cst_1 = arith.constant 2.560000e+02 : f32
    %3 = vector.broadcast %cst_1 : f32 to vector<4x1xf32>
    %4 = arith.divf %2, %3 : vector<4x1xf32>
    %5 = vector.broadcast %4 : vector<4x1xf32> to vector<4x256xf32>
    %6 = arith.subf %0, %5 : vector<4x256xf32>
    %7 = arith.mulf %6, %6 : vector<4x256xf32>
    %cst_2 = arith.constant dense<0.000000e+00> : vector<4xf32>
    %8 = vector.multi_reduction <add>, %7, %cst_2 [1] : vector<4x256xf32> to vector<4xf32>
    %9 = vector.shape_cast %8 : vector<4xf32> to vector<4x1xf32>
    %cst_3 = arith.constant 2.560000e+02 : f32
    %10 = vector.broadcast %cst_3 : f32 to vector<4x1xf32>
    %11 = arith.divf %9, %10 : vector<4x1xf32>
    %cst_4 = arith.constant 9.99999974E-6 : f32
    %12 = vector.broadcast %cst_4 : f32 to vector<4x1xf32>
    %13 = arith.addf %11, %12 : vector<4x1xf32>
    %14 = math.rsqrt %13 : vector<4x1xf32>
    %c0_5 = arith.constant 0 : index
    %c0_6 = arith.constant 0 : index
    %15 = vector.load %arg2[%c0_5, %c0_6] : memref<4x256xf32, #tpu.memory_space<vmem>>, vector<4x256xf32>
    %c0_7 = arith.constant 0 : index
    %c0_8 = arith.constant 0 : index
    %16 = vector.load %arg3[%c0_7, %c0_8] : memref<4x256xf32, #tpu.memory_space<vmem>>, vector<4x256xf32>
    %cst_9 = arith.constant 1.000000e+00 : f32
    %17 = vector.broadcast %cst_9 : f32 to vector<4x256xf32>
    %18 = arith.addf %15, %17 : vector<4x256xf32>
    %19 = vector.broadcast %14 : vector<4x1xf32> to vector<4x256xf32>
    %20 = arith.mulf %18, %19 : vector<4x256xf32>
    %21 = arith.mulf %6, %20 : vector<4x256xf32>
    %22 = arith.addf %21, %16 : vector<4x256xf32>
    %c0_10 = arith.constant 0 : index
    %c0_11 = arith.constant 0 : index
    %23 = vector.load %arg4[%c0_10, %c0_11] : memref<4x256xf32, #tpu.memory_space<vmem>>, vector<4x256xf32>
    tpu.vector_store %arg4[%c0_10, %c0_11], %22 {strides = array<i32>} : memref<4x256xf32, #tpu.memory_space<vmem>>, vector<4x256xf32>,
    return
  }
  func.func @transform_0(%arg0: i32) -> (i32, i32) {
    %c0_i32 = arith.constant 0 : i32
    %c0_i32_0 = arith.constant 0 : i32
    return %arg0, %c0_i32 : i32, i32
  }
  func.func @transform_1(%arg0: i32) -> (i32, i32) {
    %c0_i32 = arith.constant 0 : i32
    %c0_i32_0 = arith.constant 0 : i32
    return %arg0, %c0_i32 : i32, i32
  }
  func.func @transform_2(%arg0: i32) -> (i32, i32) {
    %c0_i32 = arith.constant 0 : i32
    %c0_i32_0 = arith.constant 0 : i32
    return %arg0, %c0_i32 : i32, i32
  }
  func.func @transform_3(%arg0: i32) -> (i32, i32) {
    %c0_i32 = arith.constant 0 : i32
    %c0_i32_0 = arith.constant 0 : i32
    return %arg0, %c0_i32 : i32, i32
  }
}

</mosaic_0001>

<bundles_post_ra>
// kernel: tpu_custom_call.1
= control target key start
LH: loop header
LB: loop body
LE: loop exit
PB: predicated region body
PF: predicated region fallthrough
CT: control target
= control target key end

     0   :  { %8 = vsyncpa [#allocation3], 0  ;;  %s251_s0 = inlined_call_operand.hbm [shape: f32[4,256], index: 0, kind: input, shape index: {}]   ;;  %s252_s1 = inlined_call_operand.hbm [shape: f32[4,256], index: 1, kind: input, shape index: {}]   ;;  %s253_s2 = inlined_call_operand.hbm [shape: f32[4,256], index: 2, kind: input, shape index: {}]   ;;  %s254_s3 = inlined_call_operand.hbm [shape: f32[4,256], index: 3, kind: output, shape index: {}]  }
   0x1   :  { %9 = vsyncpa [#allocation6], 0 }
   0x2   :  { %10 = vsyncpa [#allocation4], 0  ;;  %s210_s12 = smov [#allocation5]   ;;  %s211_s14 = smov [#allocation2]  }
   0x3   :  { %s27_s13 = sshll.u32 %s210_s12, 4  ;;  %s17_s15 = sshll.u32 %s211_s14, 4  ;;  %s28_s13 = int_to_ptr.vmem [resolvable:$true] %s27_s13  ;;  %s18_s15 = int_to_ptr.vmem [resolvable:$true] %s17_s15 }
   0x4   :  { %s132_s16 = scalar_lea.vmem %s28_s13, 128  ;;  %p137_p1 = scmp.lt.s32.totalorder %s28_s13, %s28_s13 }
   0x5   :  { %p133_p0 = scmp.ne.s32.totalorder %s28_s13, %s132_s16  ;;  %p138_p2 = scmp.lt.s32.totalorder %s132_s16, %s132_s16 }
   0x7   :  { %p139_p3 = por %p138_p2, %p137_p1 }
   0x9   :  { %p140_p4 = pnand %p139_p3, %p133_p0 }
   0xb   :  { %143 = shalt.err (!%p140_p4)
}
   0xc   :  { %30 = dma.hbm_to_vmem [thread:$0]  %s252_s1, 128, %s28_s13, [#allocation6]  }
   0xd   :  { %s152_s19 = scalar_lea.vmem %s18_s15, 128  ;;  %p157_p6 = scmp.lt.s32.totalorder %s18_s15, %s18_s15 }
   0xe   :  { %p153_p5 = scmp.ne.s32.totalorder %s18_s15, %s152_s19  ;;  %p158_p7 = scmp.lt.s32.totalorder %s152_s19, %s152_s19 }
  0x10   :  { %p159_p8 = por %p158_p7, %p157_p6 }
  0x12   :  { %p160_p9 = pnand %p159_p8, %p153_p5 }
  0x14   :  { %163 = shalt.err (!%p160_p9)
}
  0x15   :  { %20 = dma.hbm_to_vmem [thread:$0]  %s251_s0, 128, %s18_s15, [#allocation3]  }
  0x16   :  { %s212_s22 = smov [#allocation7]  }
  0x17   :  { %s37_s23 = sshll.u32 %s212_s22, 4  ;;  %s38_s23 = int_to_ptr.vmem [resolvable:$true] %s37_s23 }
  0x18   :  { %s172_s24 = scalar_lea.vmem %s38_s23, 128  ;;  %p177_p11 = scmp.lt.s32.totalorder %s38_s23, %s38_s23 }
  0x19   :  { %p173_p10 = scmp.ne.s32.totalorder %s38_s23, %s172_s24  ;;  %p178_p12 = scmp.lt.s32.totalorder %s172_s24, %s172_s24 }
  0x1b   :  { %p179_p13 = por %p178_p12, %p177_p11 }
  0x1d   :  { %p180_p0 = pnand %p179_p13, %p173_p10 }
  0x1f   :  { %183 = shalt.err (!%p180_p0)
}
  0x20   :  { %40 = dma.hbm_to_vmem [thread:$0]  %s253_s2, 128, %s38_s23, [#allocation6]  }
  0x21   :  { %204 = dma.done.wait [#allocation3], 128  }
  0x22   :  { %205 = vsyncadd [#allocation3], 4294967168 }
  0x23   :  { %206 = dma.done.wait [#allocation6], 256  }
  0x24   :  { %207 = vsyncadd [#allocation6], 4294967040  ;;  %vm54_vm0 = vcmask 1043456   ;;  %v50_v0 = vld [vmem:[#allocation2] sm:$0xff]  ;;  %v213_v5 = vmov 839922192   ;;  %v66_v7 = vlaneseq }
  0x25   :  { %v52_v1 = vcombine.high %v50_v0, %v50_v0  ;;  %v55_v2 = vsel %vm54_vm0, %v50_v0, 0.0  ;;  %v64_v6 = vunpack.c.l.s4 %v213_v5  ;;  %v84_v23 = vld [vmem:[#allocation5] sm:$0xff]  ;;  %v85_v28 = vld [vmem:[#allocation7] sm:$0xff]  ;;  %s214_s0 = smov [#allocation8]  }
  0x26   :  { %v67_v9 = vshrl.u32 %v66_v7, 7  ;;  %v86_v24 = vadd.f32 1.0, %v84_v23  ;;  %s106_s2 = sshll.u32 %s214_s0, 4  ;;  %s107_s2 = int_to_ptr.vmem [resolvable:$true] %s106_s2 }
  0x27   :  { %v56_v3 = vsel %vm54_vm0, %v52_v1, 0.0  ;;  %v65_v8 = vunpack.c.0.s8 %v64_v6  ;;  %s184_s26 = scalar_lea.vmem %s107_s2, 128  ;;  %p189_p2 = scmp.lt.s32.totalorder %s107_s2, %s107_s2 }
  0x28   :  { %v57_v4 = vadd.f32 %v56_v3, %v55_v2  ;;  %p185_p1 = scmp.ne.s32.totalorder %s107_s2, %s184_s26  ;;  %p190_p3 = scmp.lt.s32.totalorder %s184_s26, %s184_s26 }
  0x29   :  { %v68_v10 = vsub.s32 %v65_v8, %v67_v9 }
  0x2a   :  { %58 = vadd.xlane.f32.xlu0 %v57_v4  ;;  %p191_p4 = por %p190_p3, %p189_p2 }
  0x2c   :  { %p192_p5 = pnand %p191_p4, %p185_p1 }
  0xb3   :  { %v59_v11 = vpop.xlane.xlu0 %58 }
  0xb4   :  { %v61_v12 = vmul.f32 0.00390625, %v59_v11 }
  0xb6   :  { %v69_v13 = vrot.slane %v61_v12, %v68_v10 }
  0xb8   :  { %v71_v14 = vsub.f32 %v50_v0, %v69_v13 }
  0xba   :  { %v72_v15 = vmul.f32 %v71_v14, %v71_v14 }
  0xbc   :  { %v74_v16 = vcombine.high %v72_v15, %v72_v15  ;;  %v76_v17 = vsel %vm54_vm0, %v72_v15, 0.0 }
  0xbe   :  { %v77_v18 = vsel %vm54_vm0, %v74_v16, 0.0 }
  0xbf   :  { %v78_v19 = vadd.f32 %v77_v18, %v76_v17 }
  0xc1   :  { %79 = vadd.xlane.f32.xlu0 %v78_v19 }
 0x14a   :  { %v80_v20 = vpop.xlane.xlu0 %79 }
 0x14b   :  { %v81_v21 = vmul.f32 0.00390625, %v80_v20 }
 0x14d   :  { %v82_v22 = vadd.f32 1e-05, %v81_v21 }
 0x14f   :  { %122 = vrsqrt.f32 %v82_v22 }
 0x15c   :  { %v123_v25 = vpop.eup %122 }
 0x15d   :  { %v94_v26 = vrot.slane %v123_v25, %v68_v10 }
 0x15f   :  { %v96_v27 = vmul.f32 %v94_v26, %v86_v24 }
 0x161   :  { %v97_v29 = vmul.f32 %v96_v27, %v71_v14 }
 0x163   :  { %v98_v30 = vadd.f32 %v97_v29, %v85_v28 }
 0x165   :  { %99 = vst [vmem:[#allocation8] sm:$0xff] %v98_v30 }
 0x166   :  { %195 = shalt.err (!%p192_p5)
}
 0x167   :  { %109 = dma.vmem_to_hbm [thread:$0]  %s107_s2, 128, %s254_s3, [#allocation4]  }
 0x168   :  { %208 = dma.done.wait [#allocation4], 128  }
 0x169   :  { %209 = vsyncadd [#allocation4], 4294967168 }
 0x16a   :  { %113 = vsyncpa [#allocation3], 1 }
 0x16b   :  { %114 = vsyncpa [#allocation6], 1 }
 0x16c   :  { %115 = vsyncpa [#allocation4], 1 }

</bundles_post_ra>
